<compile_context>
chip_gen: v7x
topology: tpu7x:2x2x1
jax: 0.10.0
libtpu: 0.0.40
codegen_flags: <defaults>
</compile_context>

<pallas_src>
import math
import numpy as np

import jax
import jax.numpy as jnp
from jax.experimental import pallas as pl
from jax.experimental.pallas import tpu as pltpu


def _round_up(x, n):
    return (x + n - 1) // n * n


# ----------------------------------------------------------------------------
# Coefficient mapping (CoefficientMappingModule equivalent), pure numpy setup.
# ----------------------------------------------------------------------------
def build_mapping(lmax, mmax):
    """perm: l-primary -> m-primary gather indices; inv: inverse; m_size[m]."""
    l_list, m_list = [], []
    for l in range(lmax + 1):
        mm = min(l, mmax)
        for m in range(-mm, mm + 1):
            l_list.append(l)
            m_list.append(m)
    m_arr = np.array(m_list)
    perm, m_size = [], []
    for m in range(mmax + 1):
        idx_r = np.nonzero(m_arr == m)[0]          # +m components
        m_size.append(int(len(idx_r)))
        perm.extend(idx_r.tolist())
        if m != 0:
            idx_i = np.nonzero(m_arr == -m)[0]     # -m components
            perm.extend(idx_i.tolist())
    perm = np.array(perm, dtype=np.int32)
    inv = np.argsort(perm).astype(np.int32)
    return perm, inv, m_size


# ----------------------------------------------------------------------------
# Deterministic parameter init (mimics torch.nn.Linear default init).
# ----------------------------------------------------------------------------
def init_params(key, sphere_channels, m_output_channels, lmax, mmax,
                extra_m0_output_channels=None):
    D0 = (lmax + 1) * sphere_channels
    O0 = m_output_channels * (lmax + 1) + (extra_m0_output_channels or 0)
    keys = jax.random.split(key, 2 + mmax)
    bound0 = 1.0 / math.sqrt(D0)
    w0 = jax.random.uniform(keys[0], (O0, D0), jnp.float32, -bound0, bound0)
    b0 = jax.random.uniform(keys[1], (1, O0), jnp.float32, -bound0, bound0)
    ws = []
    for m in range(1, mmax + 1):
        ncoef = lmax - m + 1
        Dm = ncoef * sphere_channels
        Om = 2 * m_output_channels * ncoef
        bnd = 1.0 / math.sqrt(Dm)
        wm = jax.random.uniform(keys[1 + m], (Om, Dm), jnp.float32, -bnd, bnd)
        wm = wm * (1.0 / math.sqrt(2.0))  # fc.weight.data.mul_(1/sqrt(2))
        ws.append(wm)
    return w0, b0, ws


# ----------------------------------------------------------------------------
# Pallas kernel: one fused, lane-aligned matmul per m-group.
# ----------------------------------------------------------------------------
def make_so2_conv_kernel(xw_pad, yw_pad):
    n_groups = len(xw_pad)  # 1 (m=0) + mmax

    def kernel(x_ref, w0_ref, b0_ref, *rest):
        wm_refs = rest[:n_groups - 1]
        y_ref = rest[n_groups - 1]

        def dot(a, w):
            # (E, D) @ (D, O), pre-transposed weights, f32 accumulation on MXU.
            return jax.lax.dot_general(a, w, (((1,), (0,)), ((), ())),
                                       preferred_element_type=jnp.float32)

        # --- m = 0: plain linear, bias add in f32, bf16 store ---
        y0 = dot(x_ref[:, 0:xw_pad[0]], w0_ref[...]) + b0_ref[...]
        y_ref[:, 0:yw_pad[0]] = y0.astype(y_ref.dtype)

        # --- m = 1 .. mmax: fused complex-weight SO(2) conv, one matmul each ---
        off_x, off_y = xw_pad[0], yw_pad[0]        # all offsets are 128-multiples
        for g in range(1, n_groups):
            xm = x_ref[:, off_x:off_x + xw_pad[g]]
            ym = dot(xm, wm_refs[g - 1][...])
            y_ref[:, off_y:off_y + yw_pad[g]] = ym.astype(y_ref.dtype)
            off_x += xw_pad[g]
            off_y += yw_pad[g]

    return kernel


# ----------------------------------------------------------------------------
# Wrapper: SO2_Convolution.forward
# ----------------------------------------------------------------------------
def so2_convolution(x_emb, x_edge, w0, b0, ws, *, sphere_channels,
                    m_output_channels, lmax, mmax,
                    extra_m0_output_channels=None, tile_e=1024):
    E, num_coeff, C = x_emb.shape
    assert C == sphere_channels
    del x_edge  # internal_weights=True -> rad_func is None; x_edge only gives num_edges

    perm, inv, m_size = build_mapping(lmax, mmax)

    # ---- m-primary permutation; cast to bf16 BEFORE the gather (halves glue bytes) ----
    x_mp = x_emb.astype(jnp.bfloat16)[:, perm, :]

    # ---- per-m input segments, pre-transposed / fused weight blocks ----
    O0 = w0.shape[0]
    D0 = m_size[0] * C
    xw, yw = [D0], [O0]
    x_segs = [x_mp[:, :m_size[0], :].reshape(E, D0)]
    w_blocks = [jnp.asarray(w0, jnp.float32).T]                 # (D0, O0)
    offset = m_size[0]
    for m in range(1, mmax + 1):
        msz = m_size[m]
        Dm = msz * C
        H = ws[m - 1].shape[0] // 2                             # m_out * ncoef
        x_segs.append(x_mp[:, offset:offset + 2 * msz, :].reshape(E, 2 * Dm))
        WrT = jnp.asarray(ws[m - 1][:H], jnp.float32).T         # (Dm, H)
        WiT = jnp.asarray(ws[m - 1][H:], jnp.float32).T         # (Dm, H)
        # [o_re | o_im] = [x_{+m} | x_{-m}] @ [[Wr^T, Wi^T], [-Wi^T, Wr^T]]
        blk = jnp.concatenate(
            [jnp.concatenate([WrT, WiT], axis=1),
             jnp.concatenate([-WiT, WrT], axis=1)], axis=0)     # (2Dm, 2H)
        w_blocks.append(blk)
        xw.append(2 * Dm)
        yw.append(2 * H)
        offset += 2 * msz

    # ---- pad every per-m column segment (in & out) to a 128-lane multiple ----
    xw_pad = [_round_up(w, 128) for w in xw]
    yw_pad = [_round_up(w, 128) for w in yw]
    F_pad = sum(xw_pad)
    O_pad = sum(yw_pad)

    x_segs = [jnp.pad(s, ((0, 0), (0, xp - s.shape[1])))
              for s, xp in zip(x_segs, xw_pad)]
    w_blocks = [jnp.pad(wb, ((0, xp - wb.shape[0]), (0, yp - wb.shape[1])))
                .astype(jnp.bfloat16)
                for wb, xp, yp in zip(w_blocks, xw_pad, yw_pad)]
    b0_f = jnp.pad(jnp.asarray(b0, jnp.float32).reshape(1, O0),
                   ((0, 0), (0, yw_pad[0] - O0)))

    # ---- generation-aware VMEM budget and E-tile selection ----
    try:
        vmem_cap = int(pltpu.get_tpu_info().vmem_capacity_bytes)
    except Exception:
        vmem_cap = 64 * 1024 * 1024          # conservative fallback (v7x per-TC VMEM)
    vmem_limit = int(vmem_cap * 0.85)        # ~54 MiB v7x, ~108 MiB v5e/v6e

    # resident weights (worst case: double-buffered) + f32 bias
    w_bytes = 2 * (sum(int(np.prod(wb.shape)) for wb in w_blocks) * 2
                   + int(np.prod(b0_f.shape)) * 4)
    # bytes per edge-row: double-buffered bf16 activation + bf16 output tiles
    row_bytes = 2 * (F_pad + O_pad) * 2
    budget = vmem_limit - w_bytes - (2 << 20)     # 2 MiB slack for compiler scratch
    tile_cap = max(16, (budget // max(row_bytes, 1)) // 16 * 16)

    E16 = _round_up(E, 16)
    tile_e = max(16, min(int(tile_e) // 16 * 16, 1024, tile_cap, E16))
    # keep >= 2 grid programs on the 'parallel' axis (v7x has 2 TensorCores)
    if E16 >= 32:
        tile_e = min(tile_e, _round_up((E16 + 1) // 2, 16))
    E_pad = _round_up(E, tile_e)

    # ---- single lane-dense m-primary bf16 input slab ----
    x_slab = jnp.concatenate(x_segs, axis=1)
    x_slab = jnp.pad(x_slab, ((0, E_pad - E), (0, 0)))

    flops = 2 * E_pad * sum(dw * ow for dw, ow in zip(xw_pad, yw_pad))
    bytes_accessed = (E_pad * F_pad * 2 + E_pad * O_pad * 2
                      + sum(int(np.prod(wb.shape)) for wb in w_blocks) * 2
                      + int(np.prod(b0_f.shape)) * 4)
    cost = pl.CostEstimate(flops=flops, transcendentals=0,
                           bytes_accessed=bytes_accessed)

    kernel = make_so2_conv_kernel(tuple(xw_pad), tuple(yw_pad))

    def run(buffer_weights_once):
        def const_spec(shape):
            # weights/bias are fetched once (constant index_map); single-buffer them
            if buffer_weights_once:
                return pl.BlockSpec(shape, lambda i: (0, 0),
                                    pipeline_mode=pl.Buffered(1))
            return pl.BlockSpec(shape, lambda i: (0, 0))

        in_specs = [pl.BlockSpec((tile_e, F_pad), lambda i: (i, 0)),   # E-tiled acts
                    const_spec(w_blocks[0].shape),
                    const_spec(b0_f.shape)]
        in_specs += [const_spec(wb.shape) for wb in w_blocks[1:]]
        out_spec = pl.BlockSpec((tile_e, O_pad), lambda i: (i, 0))

        return pl.pallas_call(
            kernel,
            out_shape=jax.ShapeDtypeStruct((E_pad, O_pad), jnp.bfloat16),
            grid=(E_pad // tile_e,),
            in_specs=in_specs,
            out_specs=out_spec,
            compiler_params=pltpu.CompilerParams(
                dimension_semantics=("parallel",),
                vmem_limit_bytes=vmem_limit),
            cost_estimate=cost,
        )(x_slab, w_blocks[0], b0_f, *w_blocks[1:])

    try:
        y = run(buffer_weights_once=True)
    except Exception:
        # fallback: default double-buffering if Buffered(1) is rejected
        y = run(buffer_weights_once=False)

    y = y[:E]                                    # drop edge-row padding (bf16)

    # ---- reassemble m-primary -> l-primary (plain-JAX glue) ----
    o0 = y[:, :O0]
    x_0_extra = None
    if extra_m0_output_channels is not None:
        # same narrow() ordering as the original module's fc_m0 output
        x_0_extra = o0[:, :extra_m0_output_channels].astype(jnp.float32)
        o0 = o0[:, extra_m0_output_channels:]
    pieces = [o0.reshape(E, lmax + 1, m_output_channels)]
    off_y = yw_pad[0]
    for m in range(1, mmax + 1):
        ncoef = lmax - m + 1
        H = ncoef * m_output_channels
        o_re = y[:, off_y:off_y + H].reshape(E, ncoef, m_output_channels)
        o_im = y[:, off_y + H:off_y + 2 * H].reshape(E, ncoef, m_output_channels)
        pieces += [o_re, o_im]
        off_y += yw_pad[m]
    out_mp = jnp.concatenate(pieces, axis=1)              # m-primary (bf16)
    out_lp = out_mp[:, inv, :].astype(jnp.float32)        # _l_primary, f32 for consumer
    if extra_m0_output_channels is not None:
        return out_lp, x_0_extra
    return out_lp


# ----------------------------------------------------------------------------
# Pure-JAX reference (same math, f32, no Pallas) for verification.
# ----------------------------------------------------------------------------
def so2_convolution_ref(x_emb, w0, b0, ws, *, sphere_channels,
                        m_output_channels, lmax, mmax):
    E, _, C = x_emb.shape
    perm, inv, m_size = build_mapping(lmax, mmax)
    x_mp = x_emb[:, perm, :]
    x0 = x_mp[:, :m_size[0], :].reshape(E, m_size[0] * C)
    o0 = x0 @ w0.T + b0
    pieces = [o0.reshape(E, lmax + 1, m_output_channels)]
    offset = m_size[0]
    for m in range(1, mmax + 1):
        msz = m_size[m]
        ncoef = lmax - m + 1
        xm = x_mp[:, offset:offset + 2 * msz, :].reshape(E, 2, msz * C)
        ym = jnp.einsum("eci,oi->eco", xm, ws[m - 1])
        half = ws[m - 1].shape[0] // 2
        yr, yi = ym[:, :, :half], ym[:, :, half:]
        x_m_r = yr[:, 0] - yi[:, 1]
        x_m_i = yr[:, 1] + yi[:, 0]
        pieces += [x_m_r.reshape(E, ncoef, m_output_channels),
                   x_m_i.reshape(E, ncoef, m_output_channels)]
        offset += 2 * msz
    out_mp = jnp.concatenate(pieces, axis=1)
    return out_mp[:, inv, :]


# ----------------------------------------------------------------------------
if __name__ == "__main__":
    # Small config consistent with the module's forward; E chosen non-multiple of
    # the tile so E-tiling / row-padding and the >=2-program rule are exercised.
    E = 37                   # num_edges
    sphere_channels = 8
    m_output_channels = 8
    lmax, mmax = 2, 2
    num_coeff = sum(2 * min(l, mmax) + 1 for l in range(lmax + 1))  # = 9

    key = jax.random.PRNGKey(0)
    kx, ke, kp = jax.random.split(key, 3)
    x_emb = jax.random.normal(kx, (E, num_coeff, sphere_channels), jnp.float32)
    x_edge = jax.random.normal(ke, (E, 16), jnp.float32)  # only len() used (rad_func=None)

    w0, b0, ws = init_params(kp, sphere_channels, m_output_channels, lmax, mmax,
                             extra_m0_output_channels=None)

    out = so2_convolution(x_emb, x_edge, w0, b0, ws,
                          sphere_channels=sphere_channels,
                          m_output_channels=m_output_channels,
                          lmax=lmax, mmax=mmax,
                          extra_m0_output_channels=None,
                          tile_e=1024)
    out = jax.block_until_ready(out)

    ref = so2_convolution_ref(x_emb, w0, b0, ws,
                              sphere_channels=sphere_channels,
                              m_output_channels=m_output_channels,
                              lmax=lmax, mmax=mmax)
    np.testing.assert_allclose(np.asarray(out), np.asarray(ref),
                               rtol=3e-2, atol=3e-2)
    assert out.shape == (E, num_coeff, m_output_channels)
    print("KERNEL_OK")
</pallas_src>

<mosaic_0001>
module attributes {stable_mosaic.version = 11 : i64} {
  func.func @kernel(%arg0: i32, %arg1: memref<32x384xbf16, #tpu.memory_space<vmem>>, %arg2: memref<128x128xbf16, #tpu.memory_space<vmem>>, %arg3: memref<1x128xf32, #tpu.memory_space<vmem>>, %arg4: memref<128x128xbf16, #tpu.memory_space<vmem>>, %arg5: memref<128x128xbf16, #tpu.memory_space<vmem>>, %arg6: memref<32x384xbf16, #tpu.memory_space<vmem>>) attributes {dimension_semantics = [#tpu.dimension_semantics<parallel>], iteration_bounds = array<i64: 2>, scalar_prefetch = 0 : i64, scratch_operands = 0 : i64, tpu.core_type = #tpu.core_type<tc>, window_params = [{transform_indices = @transform_0, window_bounds = array<i64: 32, 384>}, {pipeline_mode = #tpu.pipeline_mode<synchronous>, transform_indices = @transform_1, window_bounds = array<i64: 128, 128>}, {pipeline_mode = #tpu.pipeline_mode<synchronous>, transform_indices = @transform_2, window_bounds = array<i64: 1, 128>}, {pipeline_mode = #tpu.pipeline_mode<synchronous>, transform_indices = @transform_3, window_bounds = array<i64: 128, 128>}, {pipeline_mode = #tpu.pipeline_mode<synchronous>, transform_indices = @transform_4, window_bounds = array<i64: 128, 128>}, {transform_indices = @transform_5, window_bounds = array<i64: 32, 384>}]} {
    %c0 = arith.constant 0 : index
    %c0_0 = arith.constant 0 : index
    %0 = vector.load %arg1[%c0, %c0_0] : memref<32x384xbf16, #tpu.memory_space<vmem>>, vector<32x128xbf16>
    %c0_1 = arith.constant 0 : index
    %c0_2 = arith.constant 0 : index
    %1 = vector.load %arg2[%c0_1, %c0_2] : memref<128x128xbf16, #tpu.memory_space<vmem>>, vector<128x128xbf16>
    %cst = arith.constant dense<0.000000e+00> : vector<32x128xf32>
    %2 = tpu.matmul %0, %1, %cst {dimension_numbers = #tpu.dot_dimension_numbers<[1], [0], [0], [1], [0, 0, 1, 1], [], []>} : vector<32x128xbf16>, vector<128x128xbf16>, vector<32x128xf32> -> vector<32x128xf32>
    %c0_3 = arith.constant 0 : index
    %c0_4 = arith.constant 0 : index
    %3 = vector.load %arg3[%c0_3, %c0_4] : memref<1x128xf32, #tpu.memory_space<vmem>>, vector<1x128xf32>
    %4 = vector.broadcast %3 : vector<1x128xf32> to vector<32x128xf32>
    %5 = arith.addf %2, %4 : vector<32x128xf32>
    %6 = arith.truncf %5 : vector<32x128xf32> to vector<32x128xbf16>
    %c0_5 = arith.constant 0 : index
    %c0_6 = arith.constant 0 : index
    %7 = vector.load %arg6[%c0_5, %c0_6] : memref<32x384xbf16, #tpu.memory_space<vmem>>, vector<32x128xbf16>
    tpu.vector_store %arg6[%c0_5, %c0_6], %6 {strides = array<i32>} : memref<32x384xbf16, #tpu.memory_space<vmem>>, vector<32x128xbf16>,
    %c0_7 = arith.constant 0 : index
    %c128 = arith.constant 128 : index
    %8 = vector.load %arg1[%c0_7, %c128] : memref<32x384xbf16, #tpu.memory_space<vmem>>, vector<32x128xbf16>
    %c0_8 = arith.constant 0 : index
    %c0_9 = arith.constant 0 : index
    %9 = vector.load %arg4[%c0_8, %c0_9] : memref<128x128xbf16, #tpu.memory_space<vmem>>, vector<128x128xbf16>
    %cst_10 = arith.constant dense<0.000000e+00> : vector<32x128xf32>
    %10 = tpu.matmul %8, %9, %cst_10 {dimension_numbers = #tpu.dot_dimension_numbers<[1], [0], [0], [1], [0, 0, 1, 1], [], []>} : vector<32x128xbf16>, vector<128x128xbf16>, vector<32x128xf32> -> vector<32x128xf32>
    %11 = arith.truncf %10 : vector<32x128xf32> to vector<32x128xbf16>
    %c0_11 = arith.constant 0 : index
    %c128_12 = arith.constant 128 : index
    %12 = vector.load %arg6[%c0_11, %c128_12] : memref<32x384xbf16, #tpu.memory_space<vmem>>, vector<32x128xbf16>
    tpu.vector_store %arg6[%c0_11, %c128_12], %11 {strides = array<i32>} : memref<32x384xbf16, #tpu.memory_space<vmem>>, vector<32x128xbf16>,
    %c0_13 = arith.constant 0 : index
    %c256 = arith.constant 256 : index
    %13 = vector.load %arg1[%c0_13, %c256] : memref<32x384xbf16, #tpu.memory_space<vmem>>, vector<32x128xbf16>
    %c0_14 = arith.constant 0 : index
    %c0_15 = arith.constant 0 : index
    %14 = vector.load %arg5[%c0_14, %c0_15] : memref<128x128xbf16, #tpu.memory_space<vmem>>, vector<128x128xbf16>
    %cst_16 = arith.constant dense<0.000000e+00> : vector<32x128xf32>
    %15 = tpu.matmul %13, %14, %cst_16 {dimension_numbers = #tpu.dot_dimension_numbers<[1], [0], [0], [1], [0, 0, 1, 1], [], []>} : vector<32x128xbf16>, vector<128x128xbf16>, vector<32x128xf32> -> vector<32x128xf32>
    %16 = arith.truncf %15 : vector<32x128xf32> to vector<32x128xbf16>
    %c0_17 = arith.constant 0 : index
    %c256_18 = arith.constant 256 : index
    %17 = vector.load %arg6[%c0_17, %c256_18] : memref<32x384xbf16, #tpu.memory_space<vmem>>, vector<32x128xbf16>
    tpu.vector_store %arg6[%c0_17, %c256_18], %16 {strides = array<i32>} : memref<32x384xbf16, #tpu.memory_space<vmem>>, vector<32x128xbf16>,
    return
  }
  func.func @transform_0(%arg0: i32) -> (i32, i32) {
    %c0_i32 = arith.constant 0 : i32
    %c0_i32_0 = arith.constant 0 : i32
    return %arg0, %c0_i32 : i32, i32
  }
  func.func @transform_1(%arg0: i32) -> (i32, i32) {
    %c0_i32 = arith.constant 0 : i32
    %c0_i32_0 = arith.constant 0 : i32
    %c0_i32_1 = arith.constant 0 : i32
    return %c0_i32, %c0_i32_0 : i32, i32
  }
  func.func @transform_2(%arg0: i32) -> (i32, i32) {
    %c0_i32 = arith.constant 0 : i32
    %c0_i32_0 = arith.constant 0 : i32
    %c0_i32_1 = arith.constant 0 : i32
    return %c0_i32, %c0_i32_0 : i32, i32
  }
  func.func @transform_3(%arg0: i32) -> (i32, i32) {
    %c0_i32 = arith.constant 0 : i32
    %c0_i32_0 = arith.constant 0 : i32
    %c0_i32_1 = arith.constant 0 : i32
    return %c0_i32, %c0_i32_0 : i32, i32
  }
  func.func @transform_4(%arg0: i32) -> (i32, i32) {
    %c0_i32 = arith.constant 0 : i32
    %c0_i32_0 = arith.constant 0 : i32
    %c0_i32_1 = arith.constant 0 : i32
    return %c0_i32, %c0_i32_0 : i32, i32
  }
  func.func @transform_5(%arg0: i32) -> (i32, i32) {
    %c0_i32 = arith.constant 0 : i32
    %c0_i32_0 = arith.constant 0 : i32
    return %arg0, %c0_i32 : i32, i32
  }
}

module attributes {stable_mosaic.version = 11 : i64} {
  func.func @kernel(%arg0: i32, %arg1: memref<32x384xbf16, #tpu.memory_space<vmem>>, %arg2: memref<128x128xbf16, #tpu.memory_space<vmem>>, %arg3: memref<1x128xf32, #tpu.memory_space<vmem>>, %arg4: memref<128x128xbf16, #tpu.memory_space<vmem>>, %arg5: memref<128x128xbf16, #tpu.memory_space<vmem>>, %arg6: memref<32x384xbf16, #tpu.memory_space<vmem>>) attributes {dimension_semantics = [#tpu.dimension_semantics<parallel>], iteration_bounds = array<i64: 2>, scalar_prefetch = 0 : i64, scratch_operands = 0 : i64, tpu.core_type = #tpu.core_type<tc>, window_params = [{transform_indices = @transform_0, window_bounds = array<i64: 32, 384>}, {pipeline_mode = #tpu.pipeline_mode<synchronous>, transform_indices = @transform_1, window_bounds = array<i64: 128, 128>}, {pipeline_mode = #tpu.pipeline_mode<synchronous>, transform_indices = @transform_2, window_bounds = array<i64: 1, 128>}, {pipeline_mode = #tpu.pipeline_mode<synchronous>, transform_indices = @transform_3, window_bounds = array<i64: 128, 128>}, {pipeline_mode = #tpu.pipeline_mode<synchronous>, transform_indices = @transform_4, window_bounds = array<i64: 128, 128>}, {transform_indices = @transform_5, window_bounds = array<i64: 32, 384>}]} {
    %c0 = arith.constant 0 : index
    %c0_0 = arith.constant 0 : index
    %0 = vector.load %arg1[%c0, %c0_0] : memref<32x384xbf16, #tpu.memory_space<vmem>>, vector<32x128xbf16>
    %c0_1 = arith.constant 0 : index
    %c0_2 = arith.constant 0 : index
    %1 = vector.load %arg2[%c0_1, %c0_2] : memref<128x128xbf16, #tpu.memory_space<vmem>>, vector<128x128xbf16>
    %cst = arith.constant dense<0.000000e+00> : vector<32x128xf32>
    %2 = tpu.matmul %0, %1, %cst {dimension_numbers = #tpu.dot_dimension_numbers<[1], [0], [0], [1], [0, 0, 1, 1], [], []>} : vector<32x128xbf16>, vector<128x128xbf16>, vector<32x128xf32> -> vector<32x128xf32>
    %c0_3 = arith.constant 0 : index
    %c0_4 = arith.constant 0 : index
    %3 = vector.load %arg3[%c0_3, %c0_4] : memref<1x128xf32, #tpu.memory_space<vmem>>, vector<1x128xf32>
    %4 = vector.broadcast %3 : vector<1x128xf32> to vector<32x128xf32>
    %5 = arith.addf %2, %4 : vector<32x128xf32>
    %6 = arith.truncf %5 : vector<32x128xf32> to vector<32x128xbf16>
    %c0_5 = arith.constant 0 : index
    %c0_6 = arith.constant 0 : index
    %7 = vector.load %arg6[%c0_5, %c0_6] : memref<32x384xbf16, #tpu.memory_space<vmem>>, vector<32x128xbf16>
    tpu.vector_store %arg6[%c0_5, %c0_6], %6 {strides = array<i32>} : memref<32x384xbf16, #tpu.memory_space<vmem>>, vector<32x128xbf16>,
    %c0_7 = arith.constant 0 : index
    %c128 = arith.constant 128 : index
    %8 = vector.load %arg1[%c0_7, %c128] : memref<32x384xbf16, #tpu.memory_space<vmem>>, vector<32x128xbf16>
    %c0_8 = arith.constant 0 : index
    %c0_9 = arith.constant 0 : index
    %9 = vector.load %arg4[%c0_8, %c0_9] : memref<128x128xbf16, #tpu.memory_space<vmem>>, vector<128x128xbf16>
    %cst_10 = arith.constant dense<0.000000e+00> : vector<32x128xf32>
    %10 = tpu.matmul %8, %9, %cst_10 {dimension_numbers = #tpu.dot_dimension_numbers<[1], [0], [0], [1], [0, 0, 1, 1], [], []>} : vector<32x128xbf16>, vector<128x128xbf16>, vector<32x128xf32> -> vector<32x128xf32>
    %11 = arith.truncf %10 : vector<32x128xf32> to vector<32x128xbf16>
    %c0_11 = arith.constant 0 : index
    %c128_12 = arith.constant 128 : index
    %12 = vector.load %arg6[%c0_11, %c128_12] : memref<32x384xbf16, #tpu.memory_space<vmem>>, vector<32x128xbf16>
    tpu.vector_store %arg6[%c0_11, %c128_12], %11 {strides = array<i32>} : memref<32x384xbf16, #tpu.memory_space<vmem>>, vector<32x128xbf16>,
    %c0_13 = arith.constant 0 : index
    %c256 = arith.constant 256 : index
    %13 = vector.load %arg1[%c0_13, %c256] : memref<32x384xbf16, #tpu.memory_space<vmem>>, vector<32x128xbf16>
    %c0_14 = arith.constant 0 : index
    %c0_15 = arith.constant 0 : index
    %14 = vector.load %arg5[%c0_14, %c0_15] : memref<128x128xbf16, #tpu.memory_space<vmem>>, vector<128x128xbf16>
    %cst_16 = arith.constant dense<0.000000e+00> : vector<32x128xf32>
    %15 = tpu.matmul %13, %14, %cst_16 {dimension_numbers = #tpu.dot_dimension_numbers<[1], [0], [0], [1], [0, 0, 1, 1], [], []>} : vector<32x128xbf16>, vector<128x128xbf16>, vector<32x128xf32> -> vector<32x128xf32>
    %16 = arith.truncf %15 : vector<32x128xf32> to vector<32x128xbf16>
    %c0_17 = arith.constant 0 : index
    %c256_18 = arith.constant 256 : index
    %17 = vector.load %arg6[%c0_17, %c256_18] : memref<32x384xbf16, #tpu.memory_space<vmem>>, vector<32x128xbf16>
    tpu.vector_store %arg6[%c0_17, %c256_18], %16 {strides = array<i32>} : memref<32x384xbf16, #tpu.memory_space<vmem>>, vector<32x128xbf16>,
    return
  }
  func.func @transform_0(%arg0: i32) -> (i32, i32) {
    %c0_i32 = arith.constant 0 : i32
    %c0_i32_0 = arith.constant 0 : i32
    return %arg0, %c0_i32 : i32, i32
  }
  func.func @transform_1(%arg0: i32) -> (i32, i32) {
    %c0_i32 = arith.constant 0 : i32
    %c0_i32_0 = arith.constant 0 : i32
    %c0_i32_1 = arith.constant 0 : i32
    return %c0_i32, %c0_i32_0 : i32, i32
  }
  func.func @transform_2(%arg0: i32) -> (i32, i32) {
    %c0_i32 = arith.constant 0 : i32
    %c0_i32_0 = arith.constant 0 : i32
    %c0_i32_1 = arith.constant 0 : i32
    return %c0_i32, %c0_i32_0 : i32, i32
  }
  func.func @transform_3(%arg0: i32) -> (i32, i32) {
    %c0_i32 = arith.constant 0 : i32
    %c0_i32_0 = arith.constant 0 : i32
    %c0_i32_1 = arith.constant 0 : i32
    return %c0_i32, %c0_i32_0 : i32, i32
  }
  func.func @transform_4(%arg0: i32) -> (i32, i32) {
    %c0_i32 = arith.constant 0 : i32
    %c0_i32_0 = arith.constant 0 : i32
    %c0_i32_1 = arith.constant 0 : i32
    return %c0_i32, %c0_i32_0 : i32, i32
  }
  func.func @transform_5(%arg0: i32) -> (i32, i32) {
    %c0_i32 = arith.constant 0 : i32
    %c0_i32_0 = arith.constant 0 : i32
    return %arg0, %c0_i32 : i32, i32
  }
}

</mosaic_0001>

<bundles_post_ra>
// kernel: tpu_custom_call.1
= control target key start
LH: loop header
LB: loop body
LE: loop exit
PB: predicated region body
PF: predicated region fallthrough
CT: control target
= control target key end

     0   :  { %10 = vsyncpa [#allocation3], 0  ;;  %s1671_s0 = inlined_call_operand.hbm [shape: bf16[64,384], index: 0, kind: input, shape index: {}]   ;;  %s1672_s1 = inlined_call_operand.hbm [shape: bf16[128,128], index: 1, kind: input, shape index: {}]   ;;  %s1673_s2 = inlined_call_operand.vmem [shape: f32[1,128], index: 2, kind: input, shape index: {}]   ;;  %s1674_s3 = inlined_call_operand.hbm [shape: bf16[128,128], index: 3, kind: input, shape index: {}]   ;;  %s1675_s4 = inlined_call_operand.hbm [shape: bf16[128,128], index: 4, kind: input, shape index: {}]   ;;  %s1676_s5 = inlined_call_operand.hbm [shape: bf16[64,384], index: 5, kind: output, shape index: {}]  }
   0x1   :  { %12 = vsyncpa [#allocation3 + $0x1], 0 }
   0x2   :  { %13 = vsyncpa [#allocation6], 0 }
   0x3   :  { %14 = vsyncpa [#allocation9], 0 }
   0x4   :  { %15 = vsyncpa [#allocation4], 0 }
   0x5   :  { %17 = vsyncpa [#allocation4 + $0x1], 0  ;;  %s1373_s18 = smov 0   ;;  %s1375_s19 = smov 0  }
   0x6   :  { %s1377_s20 = smov 0   ;;  %s1379_s21 = smov 0  }
   0x7 LB: > { %s1394_s22 = sadd.s32 4294967295, %s1330_s21   ;;  %s862_s23 = sadd.s32 4294967294, %s1330_s21   ;;  %s1330_s21 = sphi %s1379_s21, %s1699_s21   ;;  %s1326_s20 = sphi %s1377_s20, %s1698_s20   ;;  %s1322_s19 = sphi %s1375_s19, %s1697_s19   ;;  %s1318_s18 = sphi %s1373_s18, %s1696_s18  }
   0x8   : > { %p43_p0 = scmp.ne.s32.totalorder %s1322_s19, %s1318_s18  ;;  %p1677_p1 = scmp.eq.s32.totalorder %s1394_s22, 0 }
   0x9   : > { %p157_p3 = scmp.eq.s32.totalorder %s862_s23, 1  ;;  %p863_p5 = scmp.ge.s32.totalorder %s1330_s21, 1 }
   0xa   : > { %p1403_p4 = por %p1677_p1, %p43_p0  ;;  %p164_p7 = scmp.lt.s32.totalorder %s1330_s21, 3 }
   0xb   : > { %p1408_p6 = por %p157_p3, %p43_p0  ;;  %s1332_s27 = smov [#allocation5]  }
   0xc   : > { %s1680_s24 = scalar_select %p1403_p4, 1, 0 }
   0xd   : > { %s1681_s25 = scalar_select %p1408_p6, 1, 0 }
   0xe   : > { %p1413_p8 = pnand %p863_p5, %p164_p7  ;;  %s176_s28 = sshll.u32 %s1332_s27, 4  ;;  %s1417_s28 = int_to_ptr.vmem [resolvable:$true] %s176_s28 }
   0xf   : > { %s1333_s30 = smov [#allocation7]   ;;  %s1334_s7 = smov [#allocation8]  }
  0x10   : > { %s1682_s26 = scalar_select %p1413_p8, 1, 0 }
  0x11   : > { %p1045_p9 = pneg %p1413_p8  ;;  %s192_s6 = sshll.u32 %s1333_s30, 4  ;;  %s1428_s6 = int_to_ptr.vmem [resolvable:$true] %s192_s6 }
  0x12   : > { %s1430_s8 = sshll.u32 %s1334_s7, 4  ;;  %s1142_s11 = scalar_lea.hbm %s1672_s1, 1024  ;;  %s206_s8 = int_to_ptr.vmem [resolvable:$true] %s1430_s8 }
  0x13   : > { %p1424_p11 = pnand %p1045_p9, %p1677_p1  ;;  %p1143_p12 = scmp.ne.s32.totalorder %s1672_s1, %s1142_s11 }
  0x14   : > { %p1149_p5 = scmp.lt.u32.totalorder %s1142_s11, %s1672_s1 }
  0x15   : > { %p1440_p13 = pneg %p1424_p11 }
  0x17   : > { %p1145_p0 = pnand %p1440_p13, %p1143_p12 }
  0x19   : > { %p1146_p3 = pneg %p1145_p0 }
  0x1b   : > { %p1151_p7 = pnand %p1149_p5, %p1146_p3 }
  0x1d   : > { %1154 = shalt.err (!%p1151_p7)
}
  0x1e   : > { %s1155_s17 = scalar_lea.vmem %s1417_s28, 1024  ;;  %p1163_p2 = scmp.lt.s32.totalorder %s1417_s28, %s1417_s28 }
  0x1f   : > { %p1156_p9 = scmp.ne.s32.totalorder %s1417_s28, %s1155_s17  ;;  %p1164_p6 = scmp.lt.s32.totalorder %s1155_s17, %s1155_s17 }
  0x21   : > { %p1158_p10 = pnand %p1156_p9, %p1440_p13  ;;  %p1165_p12 = por %p1164_p6, %p1163_p2 }
  0x23   : > { %p1159_p1 = pneg %p1158_p10 }
  0x25   : > { %p1166_p0 = pnand %p1165_p12, %p1159_p1 }
  0x27   : > { %1169 = shalt.err (!%p1166_p0)
}
  0x28   : > { %s1335_s23 = smov 64   ;;  %s1336_s27 = smov 4  }
  0x29   : > { %1048 = dma.hbm_to_vmem [thread:$0]  (!%p1424_p11), %s1672_s1, 1024, %s1417_s28, [#allocation6], %s1335_s23, %s1335_s23, %s1336_s27  }
  0x2a   : > { %s1170_s11 = scalar_lea.hbm %s1674_s3, 1024 }
  0x2b   : > { %p1171_p1 = scmp.ne.s32.totalorder %s1674_s3, %s1170_s11  ;;  %p1177_p10 = scmp.lt.u32.totalorder %s1170_s11, %s1674_s3 }
  0x2d   : > { %p1173_p2 = pnand %p1171_p1, %p1440_p13 }
  0x2f   : > { %p1174_p6 = pneg %p1173_p2 }
  0x31   : > { %p1179_p3 = pnand %p1177_p10, %p1174_p6 }
  0x33   : > { %1182 = shalt.err (!%p1179_p3)
}
  0x34   : > { %s1183_s28 = scalar_lea.vmem %s1428_s6, 1024  ;;  %p1191_p12 = scmp.lt.s32.totalorder %s1428_s6, %s1428_s6 }
  0x35   : > { %p1184_p5 = scmp.ne.s32.totalorder %s1428_s6, %s1183_s28  ;;  %p1192_p0 = scmp.lt.s32.totalorder %s1183_s28, %s1183_s28 }
  0x37   : > { %p1186_p7 = pnand %p1184_p5, %p1440_p13  ;;  %p1193_p1 = por %p1192_p0, %p1191_p12 }
  0x39   : > { %p1187_p9 = pneg %p1186_p7 }
  0x3b   : > { %p1194_p2 = pnand %p1193_p1, %p1187_p9 }
  0x3d   : > { %1197 = shalt.err (!%p1194_p2)
}
  0x3e   : > { %1051 = dma.hbm_to_vmem [thread:$0]  (!%p1424_p11), %s1674_s3, 1024, %s1428_s6, [#allocation6], %s1335_s23, %s1335_s23, %s1336_s27  }
  0x3f   : > { %s1198_s10 = scalar_lea.hbm %s1675_s4, 1024 }
  0x40   : > { %p1199_p6 = scmp.ne.s32.totalorder %s1675_s4, %s1198_s10  ;;  %p1205_p5 = scmp.lt.u32.totalorder %s1198_s10, %s1675_s4 }
  0x42   : > { %p1201_p10 = pnand %p1199_p6, %p1440_p13 }
  0x44   : > { %p1202_p3 = pneg %p1201_p10 }
  0x46   : > { %p1207_p7 = pnand %p1205_p5, %p1202_p3 }
  0x48   : > { %1210 = shalt.err (!%p1207_p7)
}
  0x49   : > { %s1211_s16 = scalar_lea.vmem %s206_s8, 1024  ;;  %p1219_p1 = scmp.lt.s32.totalorder %s206_s8, %s206_s8 }
  0x4a   : > { %p1212_p9 = scmp.ne.s32.totalorder %s206_s8, %s1211_s16  ;;  %p1220_p2 = scmp.lt.s32.totalorder %s1211_s16, %s1211_s16 }
  0x4c   : > { %p1214_p12 = pnand %p1212_p9, %p1440_p13  ;;  %p1221_p4 = por %p1220_p2, %p1219_p1 }
  0x4e   : > { %p1215_p0 = pneg %p1214_p12 }
  0x50   : > { %p1222_p8 = pnand %p1221_p4, %p1215_p0 }
  0x52   : > { %1225 = shalt.err (!%p1222_p8)
}
  0x53   : > { %1054 = dma.hbm_to_vmem [thread:$0]  (!%p1424_p11), %s1675_s4, 1024, %s206_s8, [#allocation9], %s1335_s23, %s1335_s23, %s1336_s27  }
  0x54   : > { %s1513_s14 = sadd.s32 1, %s1330_s21   ;;  %s30_s17 = sadd.s32 1, %s1326_s20 }
  0x55   : > { %s27_s29 = ssub.s32 %s1330_s21, %s1513_s14  ;;  %p37_p8 = scmp.ne.s32.totalorder %s1326_s20, %s1322_s19 }
  0x56   : > { %p28_p4 = scmp.eq.s32.totalorder %s27_s29, 0  ;;  %p38_p13 = scmp.eq.s32.totalorder %s1330_s21, 0 }
  0x57   : > { %p1066_p6 = scmp.lt.s32.totalorder %s1330_s21, 2  ;;  %p1685_p3 = scmp.eq.s32.totalorder %s1394_s22, 1 }
  0x58   : > { %s1523_s30 = scalar_select %p28_p4, %s1326_s20, %s30_s17  }
  0x59   : > { %p39_p10 = por %p38_p13, %p37_p8  ;;  %p1527_p5 = por %p1685_p3, %p37_p8 }
  0x5a   : > { %s219_s9 = sand.u32 1, %s1326_s20   ;;  %s1026_s10 = smul.u32 768, %s1330_s21 }
  0x5b   : > { %s1025_s8 = smul.u32 48, %s219_s9  ;;  %p1538_p11 = pnand %p1066_p6, %p39_p10 }
  0x5c   : > { %s1536_s11 = scalar_lea.hbm %s1671_s0, %s1026_s10  ;;  %s1544_s16 = scalar_lea.sflag [#allocation3], %s219_s9 }
  0x5d   : > { %s223_s13 = scalar_lea.vmem [#allocation2], %s1025_s8  ;;  %s1226_s6 = scalar_lea.hbm %s1536_s11, 768 }
  0x5e   : > { %s231_s15 = sshll.u32 %s223_s13, 4  ;;  %p1227_p7 = scmp.ne.s32.totalorder %s1536_s11, %s1226_s6  ;;  %s1542_s15 = int_to_ptr.vmem [resolvable:$true] %s231_s15 }
  0x5f   : > { %p1228_p9 = pneg %p1538_p11  ;;  %s1231_s17 = scalar_lea.hbm %s1671_s0, 1536 }
  0x60   : > { %p1232_p1 = scmp.lt.u32.totalorder %s1536_s11, %s1671_s0  ;;  %p1233_p2 = scmp.lt.u32.totalorder %s1231_s17, %s1226_s6 }
  0x61   : > { %p1229_p12 = pnand %p1228_p9, %p1227_p7  ;;  %p1235_p8 = scmp.lt.u32.totalorder %s1226_s6, %s1536_s11 }
  0x62   : > { %p1234_p4 = por %p1233_p2, %p1232_p1 }
  0x63   : > { %p1230_p0 = pneg %p1229_p12 }
  0x64   : > { %p1236_p13 = por %p1235_p8, %p1234_p4 }
  0x66   : > { %p1237_p6 = pnand %p1236_p13, %p1230_p0 }
  0x68   : > { %1240 = shalt.err (!%p1237_p6)
}
  0x69   : > { %s1241_s9 = scalar_lea.vmem %s1542_s15, 768  ;;  %s1337_s8 = smov [#allocation2]  }
  0x6a   : > { %p1242_p10 = scmp.ne.s32.totalorder %s1542_s15, %s1241_s9  ;;  %s1246_s27 = sshll.u32 %s1337_s8, 4  ;;  %s1247_s27 = int_to_ptr.vmem [resolvable:$false] %s1246_s27 }
  0x6b   : > { %s1248_s13 = scalar_lea.vmem %s1247_s27, 1536  ;;  %p1249_p12 = scmp.lt.s32.totalorder %s1542_s15, %s1247_s27 }
  0x6c   : > { %p1244_p3 = pnand %p1242_p10, %p1228_p9  ;;  %p1250_p1 = scmp.lt.s32.totalorder %s1248_s13, %s1241_s9 }
  0x6e   : > { %p1245_p7 = pneg %p1244_p3  ;;  %p1251_p2 = por %p1250_p1, %p1249_p12 }
  0x70   : > { %p1252_p4 = pnand %p1251_p2, %p1245_p7 }
  0x72   : > { %1255 = shalt.err (!%p1252_p4)
}
  0x73   : > { %s1338_s6 = smov 192   ;;  %s1339_s28 = smov 12  }
  0x74   : > { %1058 = dma.hbm_to_vmem [thread:$0]  (!%p1538_p11), %s1536_s11, 768, %s1542_s15, %s1544_s16, %s1338_s6, %s1338_s6, %s1339_s28  }
  0x75   : > { %p1688_p9 = scmp.ne.s32.totalorder %s1682_s26, 0 }
  0x76   : > { %s1575_s29 = sand.u32 (!%p1688_p9), 1, %s1322_s19   ;;  %p1689_p0 = scmp.ne.s32.totalorder (!%p1688_p9), %s1680_s24, 0 }
  0x77   : > { %243 = sbr.rel (%p1688_p9) target bundleno = 431 (0x1af), region = 40  ;;  %s246_s10 = scalar_lea.sflag (!%p1688_p9), [#allocation3], %s1575_s29 }
  0x78   : > { %s1027_s17 = smul.u32 (!%p1688_p9), 48, %s1575_s29 }
  0x7a   : > { %s1581_s23 = scalar_lea.vmem (!%p1688_p9), [#allocation2], %s1027_s17 }
  0x7e   : > { %1301 = dma.done.wait (%p1689_p0), %s246_s10, 768  }
  0x7f   : > { %1303 = vsyncadd (%p1689_p0), %s246_s10, 4294966528  ;;  %p1690_p11 = scmp.eq.s32.totalorder %s1394_s22, 0 }
  0x81   : > { %1305 = dma.done.wait (%p1690_p11), [#allocation6], 2048   ;;  %p1691_p8 = pmov %p1690_p11 }
  0x83   : > { %1307 = vsyncadd (%p1691_p8), [#allocation6], 4294965248  ;;  %p1692_p13 = pmov %p1691_p8 }
  0x84   : > { %p1693_p6 = pmov %p1691_p8 }
  0x85   : > { %1309 = dma.done.wait (%p1692_p13), [#allocation9], 1024  }
  0x86   : > { %1311 = vsyncadd (%p1693_p6), [#allocation9], 4294966272  ;;  %v1112_v0 = vld [vmem:[#allocation5] sm:$0xff]   ;;  %v1113_v1 = vld [vmem:[#allocation5 + $0x8] sm:$0xff]   ;;  %s1606_s11 = scalar_lea.vmem [#allocation10], %s1027_s17  ;;  %s1028_s12 = smul.u32 768, %s1394_s22 }
  0x87   : > { %965 = vmatprep.subr.bf16.mxu0 %v1112_v0  ;;  %v1114_v2 = vld [vmem:[#allocation5 + $0x10] sm:$0xff]   ;;  %v1115_v3 = vld [vmem:[#allocation5 + $0x18] sm:$0xff]   ;;  %v1120_v4 = vld [vmem:[#allocation7] sm:$0xff]   ;;  %s760_s15 = sshll.u32 %s1606_s11, 4  ;;  %s746_s22 = scalar_lea.sflag [#allocation4], %s1575_s29  ;;  %s1624_s15 = int_to_ptr.vmem [resolvable:$true] %s760_s15 }
  0x88   : > { %966 = vmatpush3.bf16.msra.mxu0 %v1112_v0  ;;  %v1121_v5 = vld [vmem:[%s1581_s23] ss:$12 sps:$4 sm:$0xff]   ;;  %985 = vmatprep.subr.bf16.mxu1 %v1120_v4  ;;  %v1137_v15 = vld [vmem:[%s1581_s23 + $0x4] ss:$12 sps:$4 sm:$0xff]   ;;  %v1140_v21 = vld [vmem:[%s1581_s23 + $0x8] ss:$12 sps:$4 sm:$0xff]   ;;  %s1622_s8 = scalar_lea.hbm %s1676_s5, %s1028_s12 }
  0x89   : > { %967 = vmatprep.subr.bf16.mxu0 %v1113_v1  ;;  %v1116_v6 = vld [vmem:[#allocation5 + $0x20] sm:$0xff]   ;;  %986 = vmatpush3.bf16.msra.mxu1 %v1120_v4  ;;  %v1124_v7 = vld [vmem:[#allocation7 + $0x8] sm:$0xff]   ;;  %v1126_v8 = vld [vmem:[#allocation7 + $0x10] sm:$0xff]   ;;  %s1256_s27 = scalar_lea.vmem %s1624_s15, 768  ;;  %s1340_s13 = smov [#allocation10]  }
  0x8a   : > { %981 = vmatprep.mubr.bf16.mxu0 %v1121_v5  ;;  %987 = vmatprep.subr.bf16.mxu1 %v1124_v7  ;;  %v1117_v9 = vld [vmem:[#allocation5 + $0x28] sm:$0xff]   ;;  %v1128_v10 = vld [vmem:[#allocation7 + $0x18] sm:$0xff]   ;;  %v1118_v11 = vld [vmem:[#allocation5 + $0x30] sm:$0xff]   ;;  %p1257_p10 = scmp.ne.s32.totalorder %s1624_s15, %s1256_s27  ;;  %s1260_s6 = sshll.u32 %s1340_s13, 4  ;;  %s1261_s6 = int_to_ptr.vmem [resolvable:$false] %s1260_s6 }
  0x8b   : > { %v1130_v12 = vld [vmem:[#allocation7 + $0x20] sm:$0xff]   ;;  %v1119_v13 = vld [vmem:[#allocation5 + $0x38] sm:$0xff]   ;;  %v1132_v14 = vld [vmem:[#allocation7 + $0x28] sm:$0xff]   ;;  %1001 = vmatprep.mubr.bf16.mxu1 %v1137_v15  ;;  %s1262_s28 = scalar_lea.vmem %s1261_s6, 1536  ;;  %p1263_p12 = scmp.lt.s32.totalorder %s1624_s15, %s1261_s6 }
  0x8c   : > { %968 = vmatpush3.bf16.msra.mxu0 %v1113_v1  ;;  %v1123_v16 = vld [vmem:[#allocation8] sm:$0xff]   ;;  %v1134_v17 = vld [vmem:[#allocation7 + $0x30] sm:$0xff]   ;;  %v1125_v19 = vld [vmem:[#allocation8 + $0x8] sm:$0xff]   ;;  %p1258_p3 = pnand %p1257_p10, %p1527_p5  ;;  %p1264_p1 = scmp.lt.s32.totalorder %s1262_s28, %s1256_s27 }
  0x8d   : > { %969 = vmatprep.subr.bf16.mxu0 %v1114_v2  ;;  %988 = vmatpush3.bf16.msra.mxu1 %v1124_v7  ;;  %v1122_v18 = vld [vmem:[%s1581_s23 + $0x18] ss:$12 sps:$4 sm:$0xff]   ;;  %v1139_v23 = vld [vmem:[%s1581_s23 + $0x1c] ss:$12 sps:$4 sm:$0xff]   ;;  %v1141_v29 = vld [vmem:[%s1581_s23 + $0x20] ss:$12 sps:$4 sm:$0xff]  }
  0x8e   : > { %989 = vmatprep.subr.bf16.mxu1 %v1126_v8  ;;  %v1136_v20 = vld [vmem:[#allocation7 + $0x38] sm:$0xff]   ;;  %v1127_v22 = vld [vmem:[#allocation8 + $0x10] sm:$0xff]   ;;  %v1131_v25 = vld [vmem:[#allocation8 + $0x20] sm:$0xff]   ;;  %p1259_p7 = pneg %p1258_p3  ;;  %p1265_p2 = por %p1264_p1, %p1263_p12 }
  0x8f   : > { %v1129_v24 = vld [vmem:[#allocation8 + $0x18] sm:$0xff]   ;;  %v1133_v26 = vld [vmem:[#allocation8 + $0x28] sm:$0xff]   ;;  %v1135_v27 = vld [vmem:[#allocation8 + $0x30] sm:$0xff]  }
  0x90   : > { %970 = vmatpush3.bf16.msra.mxu0 %v1114_v2  ;;  %v1138_v28 = vld [vmem:[#allocation8 + $0x38] sm:$0xff]   ;;  %v875_v30 = vld [vmem:[%s1673_s2] ss:$0 sm:$0xff]  ;;  %p1266_p4 = pnand %p1265_p2, %p1259_p7 }
  0x91   : > { %971 = vmatprep.subr.bf16.mxu0 %v1115_v3  ;;  %990 = vmatpush3.bf16.msra.mxu1 %v1126_v8 }
  0x92   : > { %991 = vmatprep.subr.bf16.mxu1 %v1128_v10 }
  0x94   : > { %972 = vmatpush3.bf16.msra.mxu0 %v1115_v3 }
  0x95   : > { %973 = vmatprep.subr.bf16.mxu0 %v1116_v6  ;;  %992 = vmatpush3.bf16.msra.mxu1 %v1128_v10 }
  0x96   : > { %993 = vmatprep.subr.bf16.mxu1 %v1130_v12 }
  0x98   : > { %974 = vmatpush3.bf16.msra.mxu0 %v1116_v6 }
  0x99   : > { %975 = vmatprep.subr.bf16.mxu0 %v1117_v9  ;;  %994 = vmatpush3.bf16.msra.mxu1 %v1130_v12 }
  0x9a   : > { %995 = vmatprep.subr.bf16.mxu1 %v1132_v14 }
  0x9c   : > { %976 = vmatpush3.bf16.msra.mxu0 %v1117_v9 }
  0x9d   : > { %977 = vmatprep.subr.bf16.mxu0 %v1118_v11  ;;  %996 = vmatpush3.bf16.msra.mxu1 %v1132_v14 }
  0x9e   : > { %997 = vmatprep.subr.bf16.mxu1 %v1134_v17 }
  0xa0   : > { %978 = vmatpush3.bf16.msra.mxu0 %v1118_v11 }
  0xa1   : > { %979 = vmatprep.subr.bf16.mxu0 %v1119_v13  ;;  %998 = vmatpush3.bf16.msra.mxu1 %v1134_v17 }
  0xa2   : > { %999 = vmatprep.subr.bf16.mxu1 %v1136_v20 }
  0xa4   : > { %980 = vmatpush3.bf16.msra.mxu0 %v1119_v13 }
  0xa5   : > { %1005 = vmatprep.subr.bf16.mxu0 %v1123_v16  ;;  %1000 = vmatpush3.bf16.msra.mxu1 %v1136_v20 }
  0xa7   : > { %982 = vmatmul.mubr.bf16.vlgmr.msra.gmra.mrb[0].mxu0 %v1122_v18 }
  0xa8   : > { %1006 = vmatpush3.bf16.msra.mxu0 %v1123_v16  ;;  %1021 = vmatprep.mubr.bf16.mxu0 %v1140_v21 }
  0xa9   : > { %1007 = vmatprep.subr.bf16.mxu0 %v1125_v19  ;;  %1002 = vmatmul.mubr.bf16.vlgmr.msra.gmra.mrb[0].mxu1 %v1139_v23 }
  0xac   : > { %1008 = vmatpush3.bf16.msra.mxu0 %v1125_v19 }
  0xad   : > { %1009 = vmatprep.subr.bf16.mxu0 %v1127_v22 }
  0xb0   : > { %1010 = vmatpush3.bf16.msra.mxu0 %v1127_v22 }
  0xb1   : > { %1011 = vmatprep.subr.bf16.mxu0 %v1129_v24 }
  0xb4   : > { %1012 = vmatpush3.bf16.msra.mxu0 %v1129_v24 }
  0xb5   : > { %1013 = vmatprep.subr.bf16.mxu0 %v1131_v25 }
  0xb8   : > { %1014 = vmatpush3.bf16.msra.mxu0 %v1131_v25 }
  0xb9   : > { %1015 = vmatprep.subr.bf16.mxu0 %v1133_v26 }
  0xbc   : > { %1016 = vmatpush3.bf16.msra.mxu0 %v1133_v26 }
  0xbd   : > { %1017 = vmatprep.subr.bf16.mxu0 %v1135_v27 }
  0xc0   : > { %1018 = vmatpush3.bf16.msra.mxu0 %v1135_v27 }
  0xc1   : > { %1019 = vmatprep.subr.bf16.mxu0 %v1138_v28 }
  0xc4   : > { %1020 = vmatpush3.bf16.msra.mxu0 %v1138_v28 }
  0xc7   : > { %1022 = vmatmul.mubr.bf16.vlgmr.msra.gmra.mrb[4].mxu0 %v1141_v29 }
 0x17a   : > { %v983_v31 = vpop.f32.mrb[0].mxu0 }
 0x17b   : > { %v421_v32 = vadd.f32 %v983_v31, %v875_v30  ;;  %v412_v33 = vpop.f32.mrb[1].mxu0 }
 0x17c   : > { %v413_v34 = vadd.f32 %v875_v30, %v412_v33  ;;  %v984_v35 = vpop.f32.mrb[2].mxu0  ;;  %v1003_v43 = vpop.f32.mrb[0].mxu1 }
 0x17d   : > { %v925_v36 = vpack.c.bf16 %v421_v32, %v421_v32  ;;  %v424_v37 = vadd.f32 %v984_v35, %v875_v30  ;;  %v415_v38 = vpop.f32.mrb[3].mxu0  ;;  %v929_v44 = vpack.c.bf16 %v1003_v43, %v1003_v43  ;;  %v561_v45 = vpop.f32.mrb[1].mxu1 }
 0x17e   : > { %v923_v39 = vpack.c.bf16 %v413_v34, %v413_v34  ;;  %v416_v40 = vadd.f32 %v875_v30, %v415_v38  ;;  %v927_v46 = vpack.c.bf16 %v561_v45, %v561_v45  ;;  %v1004_v47 = vpop.f32.mrb[2].mxu1 }
 0x17f   : > { %445 = vst [vmem:[%s1606_s11 + $0x18] sm:$0xf] %v925_v36  ;;  %v926_v41 = vpack.c.bf16 %v424_v37, %v424_v37  ;;  %594 = vst [vmem:[%s1606_s11 + $0x1c] sm:$0xf] %v929_v44  ;;  %v930_v48 = vpack.c.bf16 %v1004_v47, %v1004_v47  ;;  %v564_v49 = vpop.f32.mrb[3].mxu1 }
 0x180   : > { %443 = vst [vmem:[%s1606_s11] sm:$0xf] %v923_v39  ;;  %v924_v42 = vpack.c.bf16 %v416_v40, %v416_v40  ;;  %592 = vst [vmem:[%s1606_s11 + $0x4] sm:$0xf] %v927_v46  ;;  %v928_v50 = vpack.c.bf16 %v564_v49, %v564_v49 }
 0x181   : > { %446 = vst [vmem:[%s1606_s11 + $0x24] sm:$0xf] %v926_v41  ;;  %595 = vst [vmem:[%s1606_s11 + $0x28] sm:$0xf] %v930_v48 }
 0x182   : > { %444 = vst [vmem:[%s1606_s11 + $0xc] sm:$0xf] %v924_v42  ;;  %593 = vst [vmem:[%s1606_s11 + $0x10] sm:$0xf] %v928_v50 }
 0x19a   : > { %v1023_v51 = vpop.f32.mrb[4].mxu0 }
 0x19b   : > { %v933_v52 = vpack.c.bf16 %v1023_v51, %v1023_v51  ;;  %v710_v53 = vpop.f32.mrb[5].mxu0 }
 0x19c   : > { %v931_v54 = vpack.c.bf16 %v710_v53, %v710_v53  ;;  %v1024_v55 = vpop.f32.mrb[6].mxu0 }
 0x19d   : > { %743 = vst [vmem:[%s1606_s11 + $0x20] sm:$0xf] %v933_v52  ;;  %v934_v56 = vpack.c.bf16 %v1024_v55, %v1024_v55  ;;  %v713_v57 = vpop.f32.mrb[7].mxu0 }
 0x19e   : > { %741 = vst [vmem:[%s1606_s11 + $0x8] sm:$0xf] %v931_v54  ;;  %v932_v58 = vpack.c.bf16 %v713_v57, %v713_v57 }
 0x19f   : > { %744 = vst [vmem:[%s1606_s11 + $0x2c] sm:$0xf] %v934_v56 }
 0x1a0   : > { %742 = vst [vmem:[%s1606_s11 + $0x14] sm:$0xf] %v932_v58 }
 0x1a1   : > { %1269 = shalt.err (!%p1266_p4)
}
 0x1a2   : > { %s1270_s17 = scalar_lea.hbm %s1622_s8, 768  ;;  %s1274_s24 = scalar_lea.hbm %s1676_s5, 1536 }
 0x1a3   : > { %p1271_p9 = scmp.ne.s32.totalorder %s1622_s8, %s1270_s17  ;;  %p1275_p8 = scmp.lt.u32.totalorder %s1622_s8, %s1676_s5 }
 0x1a4   : > { %p1276_p13 = scmp.lt.u32.totalorder %s1274_s24, %s1270_s17  ;;  %p1278_p10 = scmp.lt.u32.totalorder %s1270_s17, %s1622_s8 }
 0x1a5   : > { %p1272_p0 = pnand %p1271_p9, %p1527_p5 }
 0x1a6   : > { %p1277_p6 = por %p1276_p13, %p1275_p8 }
 0x1a7   : > { %p1273_p11 = pneg %p1272_p0 }
 0x1a8   : > { %p1279_p3 = por %p1278_p10, %p1277_p6 }
 0x1aa   : > { %p1280_p7 = pnand %p1279_p3, %p1273_p11 }
 0x1ac   : > { %1283 = shalt.err (!%p1280_p7)
}
 0x1ad   : > { %s1341_s12 = smov 192   ;;  %s1342_s16 = smov 12  }
 0x1ae   : > { %1043 = dma.vmem_to_hbm [thread:$0]  (%p1527_p5), %s1624_s15, 768, %s1622_s8, %s746_s22, %s1341_s12, %s1341_s12, %s1342_s16  }
 0x1af PF: > { %s775_s9 = sand.u32 1, %s1318_s18   ;;  %p1694_p12 = scmp.ne.s32.totalorder %s1681_s25, 0 }
 0x1b0   : > { %p1695_p1 = scmp.ge.s32.totalorder %s1330_s21, 2  ;;  %s776_s27 = scalar_lea.sflag [#allocation4], %s775_s9 }
 0x1b2   : > { %p1060_p2 = pnand %p1695_p1, %p1694_p12 }
 0x1b4   : > { %1313 = dma.done.wait (!%p1060_p2), %s776_s27, 768  }
 0x1b5   : > { %1315 = vsyncadd (!%p1060_p2), %s776_s27, 4294966528  ;;  %p20_p4 = scmp.ge.s32.totalorder %s1513_s14, 4   ;;  %s1696_s18 = smov %s1322_s19 }
 0x1b6   : > { %s1697_s19 = smov %s1326_s20  ;;  %s1698_s20 = smov %s1523_s30 }
 0x1b7   : > { %s1699_s21 = smov %s1513_s14  ;;  %22 = sbr.rel (!%p20_p4) target bundleno = 7 (0x7), region = 97 }
 0x1be   :  { %781 = vsyncpa [#allocation3], 1 }
 0x1bf   :  { %783 = vsyncpa [#allocation3 + $0x1], 1 }
 0x1c0   :  { %784 = vsyncpa [#allocation6], 1 }
 0x1c1   :  { %785 = vsyncpa [#allocation9], 1 }
 0x1c2   :  { %786 = vsyncpa [#allocation4], 1 }
 0x1c3   :  { %788 = vsyncpa [#allocation4 + $0x1], 1 }

// kernel: tpu_custom_call.1
= control target key start
LH: loop header
LB: loop body
LE: loop exit
PB: predicated region body
PF: predicated region fallthrough
CT: control target
= control target key end

     0   :  { %10 = vsyncpa [#allocation3], 0  ;;  %s1671_s0 = inlined_call_operand.hbm [shape: bf16[64,384], index: 0, kind: input, shape index: {}]   ;;  %s1672_s1 = inlined_call_operand.hbm [shape: bf16[128,128], index: 1, kind: input, shape index: {}]   ;;  %s1673_s2 = inlined_call_operand.vmem [shape: f32[1,128], index: 2, kind: input, shape index: {}]   ;;  %s1674_s3 = inlined_call_operand.hbm [shape: bf16[128,128], index: 3, kind: input, shape index: {}]   ;;  %s1675_s4 = inlined_call_operand.hbm [shape: bf16[128,128], index: 4, kind: input, shape index: {}]   ;;  %s1676_s5 = inlined_call_operand.hbm [shape: bf16[64,384], index: 5, kind: output, shape index: {}]  }
   0x1   :  { %12 = vsyncpa [#allocation3 + $0x1], 0 }
   0x2   :  { %13 = vsyncpa [#allocation6], 0 }
   0x3   :  { %14 = vsyncpa [#allocation9], 0 }
   0x4   :  { %15 = vsyncpa [#allocation4], 0 }
   0x5   :  { %17 = vsyncpa [#allocation4 + $0x1], 0  ;;  %s1373_s18 = smov 0   ;;  %s1375_s19 = smov 0  }
   0x6   :  { %s1377_s20 = smov 0   ;;  %s1379_s21 = smov 0  }
   0x7 LB: > { %s1394_s22 = sadd.s32 4294967295, %s1330_s21   ;;  %s862_s23 = sadd.s32 4294967294, %s1330_s21   ;;  %s1330_s21 = sphi %s1379_s21, %s1699_s21   ;;  %s1326_s20 = sphi %s1377_s20, %s1698_s20   ;;  %s1322_s19 = sphi %s1375_s19, %s1697_s19   ;;  %s1318_s18 = sphi %s1373_s18, %s1696_s18  }
   0x8   : > { %p43_p0 = scmp.ne.s32.totalorder %s1322_s19, %s1318_s18  ;;  %p1677_p1 = scmp.eq.s32.totalorder %s1394_s22, 0 }
   0x9   : > { %p157_p3 = scmp.eq.s32.totalorder %s862_s23, 1  ;;  %p863_p5 = scmp.ge.s32.totalorder %s1330_s21, 1 }
   0xa   : > { %p1403_p4 = por %p1677_p1, %p43_p0  ;;  %p164_p7 = scmp.lt.s32.totalorder %s1330_s21, 3 }
   0xb   : > { %p1408_p6 = por %p157_p3, %p43_p0  ;;  %s1332_s27 = smov [#allocation5]  }
   0xc   : > { %s1680_s24 = scalar_select %p1403_p4, 1, 0 }
   0xd   : > { %s1681_s25 = scalar_select %p1408_p6, 1, 0 }
   0xe   : > { %p1413_p8 = pnand %p863_p5, %p164_p7  ;;  %s176_s28 = sshll.u32 %s1332_s27, 4  ;;  %s1417_s28 = int_to_ptr.vmem [resolvable:$true] %s176_s28 }
   0xf   : > { %s1333_s30 = smov [#allocation7]   ;;  %s1334_s7 = smov [#allocation8]  }
  0x10   : > { %s1682_s26 = scalar_select %p1413_p8, 1, 0 }
  0x11   : > { %p1045_p9 = pneg %p1413_p8  ;;  %s192_s6 = sshll.u32 %s1333_s30, 4  ;;  %s1428_s6 = int_to_ptr.vmem [resolvable:$true] %s192_s6 }
  0x12   : > { %s1430_s8 = sshll.u32 %s1334_s7, 4  ;;  %s1142_s11 = scalar_lea.hbm %s1672_s1, 1024  ;;  %s206_s8 = int_to_ptr.vmem [resolvable:$true] %s1430_s8 }
  0x13   : > { %p1424_p11 = pnand %p1045_p9, %p1677_p1  ;;  %p1143_p12 = scmp.ne.s32.totalorder %s1672_s1, %s1142_s11 }
  0x14   : > { %p1149_p5 = scmp.lt.u32.totalorder %s1142_s11, %s1672_s1 }
  0x15   : > { %p1440_p13 = pneg %p1424_p11 }
  0x17   : > { %p1145_p0 = pnand %p1440_p13, %p1143_p12 }
  0x19   : > { %p1146_p3 = pneg %p1145_p0 }
  0x1b   : > { %p1151_p7 = pnand %p1149_p5, %p1146_p3 }
  0x1d   : > { %1154 = shalt.err (!%p1151_p7)
}
  0x1e   : > { %s1155_s17 = scalar_lea.vmem %s1417_s28, 1024  ;;  %p1163_p2 = scmp.lt.s32.totalorder %s1417_s28, %s1417_s28 }
  0x1f   : > { %p1156_p9 = scmp.ne.s32.totalorder %s1417_s28, %s1155_s17  ;;  %p1164_p6 = scmp.lt.s32.totalorder %s1155_s17, %s1155_s17 }
  0x21   : > { %p1158_p10 = pnand %p1156_p9, %p1440_p13  ;;  %p1165_p12 = por %p1164_p6, %p1163_p2 }
  0x23   : > { %p1159_p1 = pneg %p1158_p10 }
  0x25   : > { %p1166_p0 = pnand %p1165_p12, %p1159_p1 }
  0x27   : > { %1169 = shalt.err (!%p1166_p0)
}
  0x28   : > { %s1335_s23 = smov 64   ;;  %s1336_s27 = smov 4  }
  0x29   : > { %1048 = dma.hbm_to_vmem [thread:$0]  (!%p1424_p11), %s1672_s1, 1024, %s1417_s28, [#allocation6], %s1335_s23, %s1335_s23, %s1336_s27  }
  0x2a   : > { %s1170_s11 = scalar_lea.hbm %s1674_s3, 1024 }
  0x2b   : > { %p1171_p1 = scmp.ne.s32.totalorder %s1674_s3, %s1170_s11  ;;  %p1177_p10 = scmp.lt.u32.totalorder %s1170_s11, %s1674_s3 }
  0x2d   : > { %p1173_p2 = pnand %p1171_p1, %p1440_p13 }
  0x2f   : > { %p1174_p6 = pneg %p1173_p2 }
  0x31   : > { %p1179_p3 = pnand %p1177_p10, %p1174_p6 }
  0x33   : > { %1182 = shalt.err (!%p1179_p3)
}
  0x34   : > { %s1183_s28 = scalar_lea.vmem %s1428_s6, 1024  ;;  %p1191_p12 = scmp.lt.s32.totalorder %s1428_s6, %s1428_s6 }
  0x35   : > { %p1184_p5 = scmp.ne.s32.totalorder %s1428_s6, %s1183_s28  ;;  %p1192_p0 = scmp.lt.s32.totalorder %s1183_s28, %s1183_s28 }
  0x37   : > { %p1186_p7 = pnand %p1184_p5, %p1440_p13  ;;  %p1193_p1 = por %p1192_p0, %p1191_p12 }
  0x39   : > { %p1187_p9 = pneg %p1186_p7 }
  0x3b   : > { %p1194_p2 = pnand %p1193_p1, %p1187_p9 }
  0x3d   : > { %1197 = shalt.err (!%p1194_p2)
}
  0x3e   : > { %1051 = dma.hbm_to_vmem [thread:$0]  (!%p1424_p11), %s1674_s3, 1024, %s1428_s6, [#allocation6], %s1335_s23, %s1335_s23, %s1336_s27  }
  0x3f   : > { %s1198_s10 = scalar_lea.hbm %s1675_s4, 1024 }
  0x40   : > { %p1199_p6 = scmp.ne.s32.totalorder %s1675_s4, %s1198_s10  ;;  %p1205_p5 = scmp.lt.u32.totalorder %s1198_s10, %s1675_s4 }
  0x42   : > { %p1201_p10 = pnand %p1199_p6, %p1440_p13 }
  0x44   : > { %p1202_p3 = pneg %p1201_p10 }
  0x46   : > { %p1207_p7 = pnand %p1205_p5, %p1202_p3 }
  0x48   : > { %1210 = shalt.err (!%p1207_p7)
}
  0x49   : > { %s1211_s16 = scalar_lea.vmem %s206_s8, 1024  ;;  %p1219_p1 = scmp.lt.s32.totalorder %s206_s8, %s206_s8 }
  0x4a   : > { %p1212_p9 = scmp.ne.s32.totalorder %s206_s8, %s1211_s16  ;;  %p1220_p2 = scmp.lt.s32.totalorder %s1211_s16, %s1211_s16 }
  0x4c   : > { %p1214_p12 = pnand %p1212_p9, %p1440_p13  ;;  %p1221_p4 = por %p1220_p2, %p1219_p1 }
  0x4e   : > { %p1215_p0 = pneg %p1214_p12 }
  0x50   : > { %p1222_p8 = pnand %p1221_p4, %p1215_p0 }
  0x52   : > { %1225 = shalt.err (!%p1222_p8)
}
  0x53   : > { %1054 = dma.hbm_to_vmem [thread:$0]  (!%p1424_p11), %s1675_s4, 1024, %s206_s8, [#allocation9], %s1335_s23, %s1335_s23, %s1336_s27  }
  0x54   : > { %s1513_s14 = sadd.s32 1, %s1330_s21   ;;  %s30_s17 = sadd.s32 1, %s1326_s20 }
  0x55   : > { %s27_s29 = ssub.s32 %s1330_s21, %s1513_s14  ;;  %p37_p8 = scmp.ne.s32.totalorder %s1326_s20, %s1322_s19 }
  0x56   : > { %p28_p4 = scmp.eq.s32.totalorder %s27_s29, 0  ;;  %p38_p13 = scmp.eq.s32.totalorder %s1330_s21, 0 }
  0x57   : > { %p1066_p6 = scmp.lt.s32.totalorder %s1330_s21, 2  ;;  %p1685_p3 = scmp.eq.s32.totalorder %s1394_s22, 1 }
  0x58   : > { %s1523_s30 = scalar_select %p28_p4, %s1326_s20, %s30_s17  }
  0x59   : > { %p39_p10 = por %p38_p13, %p37_p8  ;;  %p1527_p5 = por %p1685_p3, %p37_p8 }
  0x5a   : > { %s219_s9 = sand.u32 1, %s1326_s20   ;;  %s1026_s10 = smul.u32 768, %s1330_s21 }
  0x5b   : > { %s1025_s8 = smul.u32 48, %s219_s9  ;;  %p1538_p11 = pnand %p1066_p6, %p39_p10 }
  0x5c   : > { %s1536_s11 = scalar_lea.hbm %s1671_s0, %s1026_s10  ;;  %s1544_s16 = scalar_lea.sflag [#allocation3], %s219_s9 }
  0x5d   : > { %s223_s13 = scalar_lea.vmem [#allocation2], %s1025_s8  ;;  %s1226_s6 = scalar_lea.hbm %s1536_s11, 768 }
  0x5e   : > { %s231_s15 = sshll.u32 %s223_s13, 4  ;;  %p1227_p7 = scmp.ne.s32.totalorder %s1536_s11, %s1226_s6  ;;  %s1542_s15 = int_to_ptr.vmem [resolvable:$true] %s231_s15 }
  0x5f   : > { %p1228_p9 = pneg %p1538_p11  ;;  %s1231_s17 = scalar_lea.hbm %s1671_s0, 1536 }
  0x60   : > { %p1232_p1 = scmp.lt.u32.totalorder %s1536_s11, %s1671_s0  ;;  %p1233_p2 = scmp.lt.u32.totalorder %s1231_s17, %s1226_s6 }
  0x61   : > { %p1229_p12 = pnand %p1228_p9, %p1227_p7  ;;  %p1235_p8 = scmp.lt.u32.totalorder %s1226_s6, %s1536_s11 }
  0x62   : > { %p1234_p4 = por %p1233_p2, %p1232_p1 }
  0x63   : > { %p1230_p0 = pneg %p1229_p12 }
  0x64   : > { %p1236_p13 = por %p1235_p8, %p1234_p4 }
  0x66   : > { %p1237_p6 = pnand %p1236_p13, %p1230_p0 }
  0x68   : > { %1240 = shalt.err (!%p1237_p6)
}
  0x69   : > { %s1241_s9 = scalar_lea.vmem %s1542_s15, 768  ;;  %s1337_s8 = smov [#allocation2]  }
  0x6a   : > { %p1242_p10 = scmp.ne.s32.totalorder %s1542_s15, %s1241_s9  ;;  %s1246_s27 = sshll.u32 %s1337_s8, 4  ;;  %s1247_s27 = int_to_ptr.vmem [resolvable:$false] %s1246_s27 }
  0x6b   : > { %s1248_s13 = scalar_lea.vmem %s1247_s27, 1536  ;;  %p1249_p12 = scmp.lt.s32.totalorder %s1542_s15, %s1247_s27 }
  0x6c   : > { %p1244_p3 = pnand %p1242_p10, %p1228_p9  ;;  %p1250_p1 = scmp.lt.s32.totalorder %s1248_s13, %s1241_s9 }
  0x6e   : > { %p1245_p7 = pneg %p1244_p3  ;;  %p1251_p2 = por %p1250_p1, %p1249_p12 }
  0x70   : > { %p1252_p4 = pnand %p1251_p2, %p1245_p7 }
  0x72   : > { %1255 = shalt.err (!%p1252_p4)
}
  0x73   : > { %s1338_s6 = smov 192   ;;  %s1339_s28 = smov 12  }
  0x74   : > { %1058 = dma.hbm_to_vmem [thread:$0]  (!%p1538_p11), %s1536_s11, 768, %s1542_s15, %s1544_s16, %s1338_s6, %s1338_s6, %s1339_s28  }
  0x75   : > { %p1688_p9 = scmp.ne.s32.totalorder %s1682_s26, 0 }
  0x76   : > { %s1575_s29 = sand.u32 (!%p1688_p9), 1, %s1322_s19   ;;  %p1689_p0 = scmp.ne.s32.totalorder (!%p1688_p9), %s1680_s24, 0 }
  0x77   : > { %243 = sbr.rel (%p1688_p9) target bundleno = 431 (0x1af), region = 40  ;;  %s246_s10 = scalar_lea.sflag (!%p1688_p9), [#allocation3], %s1575_s29 }
  0x78   : > { %s1027_s17 = smul.u32 (!%p1688_p9), 48, %s1575_s29 }
  0x7a   : > { %s1581_s23 = scalar_lea.vmem (!%p1688_p9), [#allocation2], %s1027_s17 }
  0x7e   : > { %1301 = dma.done.wait (%p1689_p0), %s246_s10, 768  }
  0x7f   : > { %1303 = vsyncadd (%p1689_p0), %s246_s10, 4294966528  ;;  %p1690_p11 = scmp.eq.s32.totalorder %s1394_s22, 0 }
  0x81   : > { %1305 = dma.done.wait (%p1690_p11), [#allocation6], 2048   ;;  %p1691_p8 = pmov %p1690_p11 }
  0x83   : > { %1307 = vsyncadd (%p1691_p8), [#allocation6], 4294965248  ;;  %p1692_p13 = pmov %p1691_p8 }
  0x84   : > { %p1693_p6 = pmov %p1691_p8 }
  0x85   : > { %1309 = dma.done.wait (%p1692_p13), [#allocation9], 1024  }
  0x86   : > { %1311 = vsyncadd (%p1693_p6), [#allocation9], 4294966272  ;;  %v1112_v0 = vld [vmem:[#allocation5] sm:$0xff]   ;;  %v1113_v1 = vld [vmem:[#allocation5 + $0x8] sm:$0xff]   ;;  %s1606_s11 = scalar_lea.vmem [#allocation10], %s1027_s17  ;;  %s1028_s12 = smul.u32 768, %s1394_s22 }
  0x87   : > { %965 = vmatprep.subr.bf16.mxu0 %v1112_v0  ;;  %v1114_v2 = vld [vmem:[#allocation5 + $0x10] sm:$0xff]   ;;  %v1115_v3 = vld [vmem:[#allocation5 + $0x18] sm:$0xff]   ;;  %v1120_v4 = vld [vmem:[#allocation7] sm:$0xff]   ;;  %s760_s15 = sshll.u32 %s1606_s11, 4  ;;  %s746_s22 = scalar_lea.sflag [#allocation4], %s1575_s29  ;;  %s1624_s15 = int_to_ptr.vmem [resolvable:$true] %s760_s15 }
  0x88   : > { %966 = vmatpush3.bf16.msra.mxu0 %v1112_v0  ;;  %v1121_v5 = vld [vmem:[%s1581_s23] ss:$12 sps:$4 sm:$0xff]   ;;  %985 = vmatprep.subr.bf16.mxu1 %v1120_v4  ;;  %v1137_v15 = vld [vmem:[%s1581_s23 + $0x4] ss:$12 sps:$4 sm:$0xff]   ;;  %v1140_v21 = vld [vmem:[%s1581_s23 + $0x8] ss:$12 sps:$4 sm:$0xff]   ;;  %s1622_s8 = scalar_lea.hbm %s1676_s5, %s1028_s12 }
  0x89   : > { %967 = vmatprep.subr.bf16.mxu0 %v1113_v1  ;;  %v1116_v6 = vld [vmem:[#allocation5 + $0x20] sm:$0xff]   ;;  %986 = vmatpush3.bf16.msra.mxu1 %v1120_v4  ;;  %v1124_v7 = vld [vmem:[#allocation7 + $0x8] sm:$0xff]   ;;  %v1126_v8 = vld [vmem:[#allocation7 + $0x10] sm:$0xff]   ;;  %s1256_s27 = scalar_lea.vmem %s1624_s15, 768  ;;  %s1340_s13 = smov [#allocation10]  }
  0x8a   : > { %981 = vmatprep.mubr.bf16.mxu0 %v1121_v5  ;;  %987 = vmatprep.subr.bf16.mxu1 %v1124_v7  ;;  %v1117_v9 = vld [vmem:[#allocation5 + $0x28] sm:$0xff]   ;;  %v1128_v10 = vld [vmem:[#allocation7 + $0x18] sm:$0xff]   ;;  %v1118_v11 = vld [vmem:[#allocation5 + $0x30] sm:$0xff]   ;;  %p1257_p10 = scmp.ne.s32.totalorder %s1624_s15, %s1256_s27  ;;  %s1260_s6 = sshll.u32 %s1340_s13, 4  ;;  %s1261_s6 = int_to_ptr.vmem [resolvable:$false] %s1260_s6 }
  0x8b   : > { %v1130_v12 = vld [vmem:[#allocation7 + $0x20] sm:$0xff]   ;;  %v1119_v13 = vld [vmem:[#allocation5 + $0x38] sm:$0xff]   ;;  %v1132_v14 = vld [vmem:[#allocation7 + $0x28] sm:$0xff]   ;;  %1001 = vmatprep.mubr.bf16.mxu1 %v1137_v15  ;;  %s1262_s28 = scalar_lea.vmem %s1261_s6, 1536  ;;  %p1263_p12 = scmp.lt.s32.totalorder %s1624_s15, %s1261_s6 }
  0x8c   : > { %968 = vmatpush3.bf16.msra.mxu0 %v1113_v1  ;;  %v1123_v16 = vld [vmem:[#allocation8] sm:$0xff]   ;;  %v1134_v17 = vld [vmem:[#allocation7 + $0x30] sm:$0xff]   ;;  %v1125_v19 = vld [vmem:[#allocation8 + $0x8] sm:$0xff]   ;;  %p1258_p3 = pnand %p1257_p10, %p1527_p5  ;;  %p1264_p1 = scmp.lt.s32.totalorder %s1262_s28, %s1256_s27 }
  0x8d   : > { %969 = vmatprep.subr.bf16.mxu0 %v1114_v2  ;;  %988 = vmatpush3.bf16.msra.mxu1 %v1124_v7  ;;  %v1122_v18 = vld [vmem:[%s1581_s23 + $0x18] ss:$12 sps:$4 sm:$0xff]   ;;  %v1139_v23 = vld [vmem:[%s1581_s23 + $0x1c] ss:$12 sps:$4 sm:$0xff]   ;;  %v1141_v29 = vld [vmem:[%s1581_s23 + $0x20] ss:$12 sps:$4 sm:$0xff]  }
  0x8e   : > { %989 = vmatprep.subr.bf16.mxu1 %v1126_v8  ;;  %v1136_v20 = vld [vmem:[#allocation7 + $0x38] sm:$0xff]   ;;  %v1127_v22 = vld [vmem:[#allocation8 + $0x10] sm:$0xff]   ;;  %v1131_v25 = vld [vmem:[#allocation8 + $0x20] sm:$0xff]   ;;  %p1259_p7 = pneg %p1258_p3  ;;  %p1265_p2 = por %p1264_p1, %p1263_p12 }
  0x8f   : > { %v1129_v24 = vld [vmem:[#allocation8 + $0x18] sm:$0xff]   ;;  %v1133_v26 = vld [vmem:[#allocation8 + $0x28] sm:$0xff]   ;;  %v1135_v27 = vld [vmem:[#allocation8 + $0x30] sm:$0xff]  }
  0x90   : > { %970 = vmatpush3.bf16.msra.mxu0 %v1114_v2  ;;  %v1138_v28 = vld [vmem:[#allocation8 + $0x38] sm:$0xff]   ;;  %v875_v30 = vld [vmem:[%s1673_s2] ss:$0 sm:$0xff]  ;;  %p1266_p4 = pnand %p1265_p2, %p1259_p7 }
  0x91   : > { %971 = vmatprep.subr.bf16.mxu0 %v1115_v3  ;;  %990 = vmatpush3.bf16.msra.mxu1 %v1126_v8 }
  0x92   : > { %991 = vmatprep.subr.bf16.mxu1 %v1128_v10 }
  0x94   : > { %972 = vmatpush3.bf16.msra.mxu0 %v1115_v3 }
  0x95   : > { %973 = vmatprep.subr.bf16.mxu0 %v1116_v6  ;;  %992 = vmatpush3.bf16.msra.mxu1 %v1128_v10 }
  0x96   : > { %993 = vmatprep.subr.bf16.mxu1 %v1130_v12 }
  0x98   : > { %974 = vmatpush3.bf16.msra.mxu0 %v1116_v6 }
  0x99   : > { %975 = vmatprep.subr.bf16.mxu0 %v1117_v9  ;;  %994 = vmatpush3.bf16.msra.mxu1 %v1130_v12 }
  0x9a   : > { %995 = vmatprep.subr.bf16.mxu1 %v1132_v14 }
  0x9c   : > { %976 = vmatpush3.bf16.msra.mxu0 %v1117_v9 }
  0x9d   : > { %977 = vmatprep.subr.bf16.mxu0 %v1118_v11  ;;  %996 = vmatpush3.bf16.msra.mxu1 %v1132_v14 }
  0x9e   : > { %997 = vmatprep.subr.bf16.mxu1 %v1134_v17 }
  0xa0   : > { %978 = vmatpush3.bf16.msra.mxu0 %v1118_v11 }
  0xa1   : > { %979 = vmatprep.subr.bf16.mxu0 %v1119_v13  ;;  %998 = vmatpush3.bf16.msra.mxu1 %v1134_v17 }
  0xa2   : > { %999 = vmatprep.subr.bf16.mxu1 %v1136_v20 }
  0xa4   : > { %980 = vmatpush3.bf16.msra.mxu0 %v1119_v13 }
  0xa5   : > { %1005 = vmatprep.subr.bf16.mxu0 %v1123_v16  ;;  %1000 = vmatpush3.bf16.msra.mxu1 %v1136_v20 }
  0xa7   : > { %982 = vmatmul.mubr.bf16.vlgmr.msra.gmra.mrb[0].mxu0 %v1122_v18 }
  0xa8   : > { %1006 = vmatpush3.bf16.msra.mxu0 %v1123_v16  ;;  %1021 = vmatprep.mubr.bf16.mxu0 %v1140_v21 }
  0xa9   : > { %1007 = vmatprep.subr.bf16.mxu0 %v1125_v19  ;;  %1002 = vmatmul.mubr.bf16.vlgmr.msra.gmra.mrb[0].mxu1 %v1139_v23 }
  0xac   : > { %1008 = vmatpush3.bf16.msra.mxu0 %v1125_v19 }
  0xad   : > { %1009 = vmatprep.subr.bf16.mxu0 %v1127_v22 }
  0xb0   : > { %1010 = vmatpush3.bf16.msra.mxu0 %v1127_v22 }
  0xb1   : > { %1011 = vmatprep.subr.bf16.mxu0 %v1129_v24 }
  0xb4   : > { %1012 = vmatpush3.bf16.msra.mxu0 %v1129_v24 }
  0xb5   : > { %1013 = vmatprep.subr.bf16.mxu0 %v1131_v25 }
  0xb8   : > { %1014 = vmatpush3.bf16.msra.mxu0 %v1131_v25 }
  0xb9   : > { %1015 = vmatprep.subr.bf16.mxu0 %v1133_v26 }
  0xbc   : > { %1016 = vmatpush3.bf16.msra.mxu0 %v1133_v26 }
  0xbd   : > { %1017 = vmatprep.subr.bf16.mxu0 %v1135_v27 }
  0xc0   : > { %1018 = vmatpush3.bf16.msra.mxu0 %v1135_v27 }
  0xc1   : > { %1019 = vmatprep.subr.bf16.mxu0 %v1138_v28 }
  0xc4   : > { %1020 = vmatpush3.bf16.msra.mxu0 %v1138_v28 }
  0xc7   : > { %1022 = vmatmul.mubr.bf16.vlgmr.msra.gmra.mrb[4].mxu0 %v1141_v29 }
 0x17a   : > { %v983_v31 = vpop.f32.mrb[0].mxu0 }
 0x17b   : > { %v421_v32 = vadd.f32 %v983_v31, %v875_v30  ;;  %v412_v33 = vpop.f32.mrb[1].mxu0 }
 0x17c   : > { %v413_v34 = vadd.f32 %v875_v30, %v412_v33  ;;  %v984_v35 = vpop.f32.mrb[2].mxu0  ;;  %v1003_v43 = vpop.f32.mrb[0].mxu1 }
 0x17d   : > { %v925_v36 = vpack.c.bf16 %v421_v32, %v421_v32  ;;  %v424_v37 = vadd.f32 %v984_v35, %v875_v30  ;;  %v415_v38 = vpop.f32.mrb[3].mxu0  ;;  %v929_v44 = vpack.c.bf16 %v1003_v43, %v1003_v43  ;;  %v561_v45 = vpop.f32.mrb[1].mxu1 }
 0x17e   : > { %v923_v39 = vpack.c.bf16 %v413_v34, %v413_v34  ;;  %v416_v40 = vadd.f32 %v875_v30, %v415_v38  ;;  %v927_v46 = vpack.c.bf16 %v561_v45, %v561_v45  ;;  %v1004_v47 = vpop.f32.mrb[2].mxu1 }
 0x17f   : > { %445 = vst [vmem:[%s1606_s11 + $0x18] sm:$0xf] %v925_v36  ;;  %v926_v41 = vpack.c.bf16 %v424_v37, %v424_v37  ;;  %594 = vst [vmem:[%s1606_s11 + $0x1c] sm:$0xf] %v929_v44  ;;  %v930_v48 = vpack.c.bf16 %v1004_v47, %v1004_v47  ;;  %v564_v49 = vpop.f32.mrb[3].mxu1 }
 0x180   : > { %443 = vst [vmem:[%s1606_s11] sm:$0xf] %v923_v39  ;;  %v924_v42 = vpack.c.bf16 %v416_v40, %v416_v40  ;;  %592 = vst [vmem:[%s1606_s11 + $0x4] sm:$0xf] %v927_v46  ;;  %v928_v50 = vpack.c.bf16 %v564_v49, %v564_v49 }
 0x181   : > { %446 = vst [vmem:[%s1606_s11 + $0x24] sm:$0xf] %v926_v41  ;;  %595 = vst [vmem:[%s1606_s11 + $0x28] sm:$0xf] %v930_v48 }
 0x182   : > { %444 = vst [vmem:[%s1606_s11 + $0xc] sm:$0xf] %v924_v42  ;;  %593 = vst [vmem:[%s1606_s11 + $0x10] sm:$0xf] %v928_v50 }
 0x19a   : > { %v1023_v51 = vpop.f32.mrb[4].mxu0 }
 0x19b   : > { %v933_v52 = vpack.c.bf16 %v1023_v51, %v1023_v51  ;;  %v710_v53 = vpop.f32.mrb[5].mxu0 }
 0x19c   : > { %v931_v54 = vpack.c.bf16 %v710_v53, %v710_v53  ;;  %v1024_v55 = vpop.f32.mrb[6].mxu0 }
 0x19d   : > { %743 = vst [vmem:[%s1606_s11 + $0x20] sm:$0xf] %v933_v52  ;;  %v934_v56 = vpack.c.bf16 %v1024_v55, %v1024_v55  ;;  %v713_v57 = vpop.f32.mrb[7].mxu0 }
 0x19e   : > { %741 = vst [vmem:[%s1606_s11 + $0x8] sm:$0xf] %v931_v54  ;;  %v932_v58 = vpack.c.bf16 %v713_v57, %v713_v57 }
 0x19f   : > { %744 = vst [vmem:[%s1606_s11 + $0x2c] sm:$0xf] %v934_v56 }
 0x1a0   : > { %742 = vst [vmem:[%s1606_s11 + $0x14] sm:$0xf] %v932_v58 }
 0x1a1   : > { %1269 = shalt.err (!%p1266_p4)
}
 0x1a2   : > { %s1270_s17 = scalar_lea.hbm %s1622_s8, 768  ;;  %s1274_s24 = scalar_lea.hbm %s1676_s5, 1536 }
 0x1a3   : > { %p1271_p9 = scmp.ne.s32.totalorder %s1622_s8, %s1270_s17  ;;  %p1275_p8 = scmp.lt.u32.totalorder %s1622_s8, %s1676_s5 }
 0x1a4   : > { %p1276_p13 = scmp.lt.u32.totalorder %s1274_s24, %s1270_s17  ;;  %p1278_p10 = scmp.lt.u32.totalorder %s1270_s17, %s1622_s8 }
 0x1a5   : > { %p1272_p0 = pnand %p1271_p9, %p1527_p5 }
 0x1a6   : > { %p1277_p6 = por %p1276_p13, %p1275_p8 }
 0x1a7   : > { %p1273_p11 = pneg %p1272_p0 }
 0x1a8   : > { %p1279_p3 = por %p1278_p10, %p1277_p6 }
 0x1aa   : > { %p1280_p7 = pnand %p1279_p3, %p1273_p11 }
 0x1ac   : > { %1283 = shalt.err (!%p1280_p7)
}
 0x1ad   : > { %s1341_s12 = smov 192   ;;  %s1342_s16 = smov 12  }
 0x1ae   : > { %1043 = dma.vmem_to_hbm [thread:$0]  (%p1527_p5), %s1624_s15, 768, %s1622_s8, %s746_s22, %s1341_s12, %s1341_s12, %s1342_s16  }
 0x1af PF: > { %s775_s9 = sand.u32 1, %s1318_s18   ;;  %p1694_p12 = scmp.ne.s32.totalorder %s1681_s25, 0 }
 0x1b0   : > { %p1695_p1 = scmp.ge.s32.totalorder %s1330_s21, 2  ;;  %s776_s27 = scalar_lea.sflag [#allocation4], %s775_s9 }
 0x1b2   : > { %p1060_p2 = pnand %p1695_p1, %p1694_p12 }
 0x1b4   : > { %1313 = dma.done.wait (!%p1060_p2), %s776_s27, 768  }
 0x1b5   : > { %1315 = vsyncadd (!%p1060_p2), %s776_s27, 4294966528  ;;  %p20_p4 = scmp.ge.s32.totalorder %s1513_s14, 4   ;;  %s1696_s18 = smov %s1322_s19 }
 0x1b6   : > { %s1697_s19 = smov %s1326_s20  ;;  %s1698_s20 = smov %s1523_s30 }
 0x1b7   : > { %s1699_s21 = smov %s1513_s14  ;;  %22 = sbr.rel (!%p20_p4) target bundleno = 7 (0x7), region = 97 }
 0x1be   :  { %781 = vsyncpa [#allocation3], 1 }
 0x1bf   :  { %783 = vsyncpa [#allocation3 + $0x1], 1 }
 0x1c0   :  { %784 = vsyncpa [#allocation6], 1 }
 0x1c1   :  { %785 = vsyncpa [#allocation9], 1 }
 0x1c2   :  { %786 = vsyncpa [#allocation4], 1 }
 0x1c3   :  { %788 = vsyncpa [#allocation4 + $0x1], 1 }

</bundles_post_ra>
